<compile_context>
chip_gen: v6e
topology: v6e:2x2x1
jax: 0.10.0
libtpu: 0.0.40
codegen_flags: <defaults>
</compile_context>

<pallas_src>
import functools

import jax
import jax.numpy as jnp
from jax import lax
from jax.experimental import pallas as pl
from jax.experimental.pallas import tpu as pltpu


def knn_block_kernel(x_ref, xn_ref, bt_ref, bn_ref, o_ref, *, k):
    """One (query_tile, reference_tile) grid cell -> K smallest squared dists."""
    # (tm, D) bf16 @ (D, tn) bf16 -> (tm, tn) f32 on the MXU.
    dots = jnp.dot(x_ref[...], bt_ref[...], preferred_element_type=jnp.float32)
    # Squared distances via the norm trick; norms are precomputed in f32.
    # Padded reference columns carry +inf norm -> d2 = +inf -> never selected.
    d2 = xn_ref[...] + bn_ref[...] - 2.0 * dots                  # (tm, tn)

    # Iteratively extract the K smallest per row (K is tiny, default 1).
    # Columns are stored one static lane-slice at a time.
    # TODO(synk): exact duplicate distances are extracted only once here, while
    # torch.topk would repeat them; irrelevant for the default K=1.
    for idx in range(k):
        m = jnp.min(d2, axis=-1, keepdims=True)                  # (tm, 1)
        o_ref[:, idx:idx + 1] = m
        if idx + 1 < k:
            d2 = jnp.where(d2 <= m, jnp.inf, d2)


class KNNModel:
    """JAX/Pallas port of the PyTorch KNNModel."""

    def __init__(self, base_data, k=1, tile_m=256, tile_n=1024):
        base = jnp.asarray(base_data, jnp.float32)
        n_ref = base.shape[0]
        base = base.reshape(n_ref, -1)
        # emulate .half() storage quantization, then store TPU-native bf16
        # TODO(synk): torch keeps fp16 storage; bf16 re-rounding adds ~2^-9 noise.
        base = base.astype(jnp.float16).astype(jnp.bfloat16)
        self.D = base.shape[1]
        self.K = int(k)
        self.norm = 2
        self.tile_m = int(tile_m)

        # Reference-axis tiling (lane axis): tn multiple of 128, clamped to set size.
        tn = min(int(tile_n), pl.cdiv(n_ref, 128) * 128)
        nb = pl.cdiv(n_ref, tn)
        ref_pad = nb * tn

        # Reference norms: computed ONCE here, in f32, from the quantized values.
        # Padded columns get +inf so they can never enter the top-K.
        b32 = base.astype(jnp.float32)
        b_norm = jnp.sum(b32 * b32, axis=1)
        b_norm = jnp.concatenate(
            [b_norm, jnp.full((ref_pad - n_ref,), jnp.inf, jnp.float32)])[None, :]

        # Pre-transpose to (D, ref_pad): natural MXU RHS, reference index on lanes.
        # TODO(synk): for very large feature dims D the (D, tn) block would exceed
        # VMEM; that case would need an extra D-tiled reduction axis.
        base_t = jnp.zeros((self.D, ref_pad), jnp.bfloat16)
        base_t = base_t.at[:, :n_ref].set(base.T)

        self.base_t = base_t
        self.base_norm = b_norm
        self.n_ref = n_ref
        self.ref_pad = ref_pad
        self.tn = tn
        self.nb = nb

    def preferred_name(self):
        return "%d-NN" % self.K

    def __call__(self, x):
        x = jnp.asarray(x, jnp.float32)
        n = x.shape[0]
        xf = x.reshape(n, -1).astype(jnp.float16).astype(jnp.bfloat16)

        # Query tile: multiple of 16 (bf16 sublane packing), clamped to tile_m.
        tm = min(self.tile_m, pl.cdiv(n, 16) * 16)
        n_pad = pl.cdiv(n, tm) * tm
        if n_pad != n:
            xf = jnp.concatenate(
                [xf, jnp.zeros((n_pad - n, self.D), jnp.bfloat16)], axis=0)

        # Query norms: computed ONCE here (f32), reused across every ref block.
        x32 = xf.astype(jnp.float32)
        x_norm = jnp.sum(x32 * x32, axis=1, keepdims=True)        # (n_pad, 1)

        D, tn, K, nb = self.D, self.tn, self.K, self.nb
        grid = (n_pad // tm, nb)

        out = pl.pallas_call(
            functools.partial(knn_block_kernel, k=K),
            out_shape=jax.ShapeDtypeStruct((nb, n_pad, K), jnp.float32),
            grid_spec=pltpu.PrefetchScalarGridSpec(
                num_scalar_prefetch=0,
                grid=grid,
                in_specs=[
                    pl.BlockSpec((tm, D), lambda i, j: (i, 0)),      # x (bf16)
                    pl.BlockSpec((tm, 1), lambda i, j: (i, 0)),      # ||x||^2
                    pl.BlockSpec((D, tn), lambda i, j: (0, j)),      # base^T (bf16)
                    pl.BlockSpec((1, tn), lambda i, j: (0, j)),      # ||b||^2
                ],
                out_specs=pl.BlockSpec((None, tm, K), lambda i, j: (j, i, 0)),
            ),
            compiler_params=pltpu.CompilerParams(
                dimension_semantics=("parallel", "parallel")),
        )(xf, x_norm, self.base_t, self.base_norm)

        # Merge the per-block K-best squared distances, then the sqrt epilogue.
        d2 = jnp.transpose(out[:, :n, :], (1, 0, 2)).reshape(n, nb * K)
        neg_topk, _ = lax.top_k(-d2, K)                              # ascending d2
        return jnp.sqrt(jnp.maximum(-neg_topk, 0.0)).astype(jnp.float32)


def _reference_knn(x, base_data, k):
    """Plain-JAX reference mirroring the PyTorch forward (.half() + f32 math)."""
    n = x.shape[0]
    xf = jnp.asarray(x).reshape(n, -1).astype(jnp.float16).astype(jnp.float32)
    bf = jnp.asarray(base_data).reshape(base_data.shape[0], -1)
    bf = bf.astype(jnp.float16).astype(jnp.float32)
    x_norm = jnp.sum(xf * xf, axis=1, keepdims=True)
    b_norm = jnp.sum(bf * bf, axis=1)[None, :]
    d2 = b_norm + x_norm - 2.0 * xf @ bf.T
    d = jnp.sqrt(jnp.maximum(d2, 0.0))
    neg_topk, _ = lax.top_k(-d, k)
    return -neg_topk


if __name__ == "__main__":
    key = jax.random.PRNGKey(0)
    k_base, k_x = jax.random.split(key)

    # small, module-consistent shapes: images of (C=4, H=16, W=16) -> D = 1024
    base_data = jax.random.normal(k_base, (200, 4, 16, 16), jnp.float32)
    x = jax.random.normal(k_x, (2, 4, 16, 16), jnp.float32)

    # K = 1 (module default)
    model1 = KNNModel(base_data, k=1)
    out1 = jax.block_until_ready(model1(x))
    ref1 = _reference_knn(x, base_data, 1)
    assert out1.shape == (2, 1) and out1.dtype == jnp.float32
    assert jnp.allclose(out1, ref1, rtol=1e-3, atol=3e-2), (out1, ref1)

    # K = 3 exercises the general top-K extraction path.
    model3 = KNNModel(base_data, k=3)
    out3 = jax.block_until_ready(model3(x))
    ref3 = _reference_knn(x, base_data, 3)
    assert out3.shape == (2, 3) and out3.dtype == jnp.float32
    assert jnp.allclose(out3, ref3, rtol=1e-3, atol=3e-2), (out3, ref3)

    print("KERNEL_OK")
</pallas_src>

<mosaic_0001>
module attributes {stable_mosaic.version = 11 : i64} {
  func.func @knn_block_kernel(%arg0: i32, %arg1: i32, %arg2: memref<16x1024xbf16, #tpu.memory_space<vmem>>, %arg3: memref<16x1xf32, #tpu.memory_space<vmem>>, %arg4: memref<1024x256xbf16, #tpu.memory_space<vmem>>, %arg5: memref<1x256xf32, #tpu.memory_space<vmem>>, %arg6: memref<1x16x1xf32, #tpu.memory_space<vmem>>) attributes {dimension_semantics = [#tpu.dimension_semantics<parallel>, #tpu.dimension_semantics<parallel>], iteration_bounds = array<i64: 1, 1>, scalar_prefetch = 0 : i64, scratch_operands = 0 : i64, tpu.core_type = #tpu.core_type<tc>, window_params = [{transform_indices = @transform_0, window_bounds = array<i64: 16, 1024>}, {transform_indices = @transform_1, window_bounds = array<i64: 16, 1>}, {transform_indices = @transform_2, window_bounds = array<i64: 1024, 256>}, {transform_indices = @transform_3, window_bounds = array<i64: 1, 256>}, {transform_indices = @transform_4, window_bounds = array<i64: 1, 16, 1>}]} {
    %c0 = arith.constant 0 : index
    %c0_0 = arith.constant 0 : index
    %0 = vector.load %arg2[%c0, %c0_0] : memref<16x1024xbf16, #tpu.memory_space<vmem>>, vector<16x1024xbf16>
    %c0_1 = arith.constant 0 : index
    %c0_2 = arith.constant 0 : index
    %1 = vector.load %arg4[%c0_1, %c0_2] : memref<1024x256xbf16, #tpu.memory_space<vmem>>, vector<1024x256xbf16>
    %cst = arith.constant dense<0.000000e+00> : vector<16x256xf32>
    %2 = tpu.matmul %0, %1, %cst {dimension_numbers = #tpu.dot_dimension_numbers<[1], [0], [0], [1], [0, 0, 1, 1], [], []>} : vector<16x1024xbf16>, vector<1024x256xbf16>, vector<16x256xf32> -> vector<16x256xf32>
    %c0_3 = arith.constant 0 : index
    %c0_4 = arith.constant 0 : index
    %3 = vector.load %arg3[%c0_3, %c0_4] : memref<16x1xf32, #tpu.memory_space<vmem>>, vector<16x1xf32>
    %c0_5 = arith.constant 0 : index
    %c0_6 = arith.constant 0 : index
    %4 = vector.load %arg5[%c0_5, %c0_6] : memref<1x256xf32, #tpu.memory_space<vmem>>, vector<1x256xf32>
    %5 = vector.broadcast %3 : vector<16x1xf32> to vector<16x256xf32>
    %6 = vector.broadcast %4 : vector<1x256xf32> to vector<16x256xf32>
    %7 = arith.addf %5, %6 : vector<16x256xf32>
    %cst_7 = arith.constant 2.000000e+00 : f32
    %8 = vector.broadcast %cst_7 : f32 to vector<16x256xf32>
    %9 = arith.mulf %8, %2 : vector<16x256xf32>
    %10 = arith.subf %7, %9 : vector<16x256xf32>
    %cst_8 = arith.constant dense<0x7F800000> : vector<16xf32>
    %11 = vector.multi_reduction <minimumf>, %10, %cst_8 [1] : vector<16x256xf32> to vector<16xf32>
    %12 = vector.shape_cast %11 : vector<16xf32> to vector<16x1xf32>
    %c0_9 = arith.constant 0 : index
    %c0_10 = arith.constant 0 : index
    %c0_11 = arith.constant 0 : index
    %13 = vector.load %arg6[%c0_9, %c0_10, %c0_11] : memref<1x16x1xf32, #tpu.memory_space<vmem>>, vector<1x16x1xf32>
    %14 = vector.shape_cast %13 : vector<1x16x1xf32> to vector<16x1xf32>
    %15 = vector.shape_cast %12 : vector<16x1xf32> to vector<1x16x1xf32>
    tpu.vector_store %arg6[%c0_9, %c0_10, %c0_11], %15 {strides = array<i32>} : memref<1x16x1xf32, #tpu.memory_space<vmem>>, vector<1x16x1xf32>,
    return
  }
  func.func @transform_0(%arg0: i32, %arg1: i32) -> (i32, i32) {
    %c0_i32 = arith.constant 0 : i32
    %c0_i32_0 = arith.constant 0 : i32
    return %arg0, %c0_i32 : i32, i32
  }
  func.func @transform_1(%arg0: i32, %arg1: i32) -> (i32, i32) {
    %c0_i32 = arith.constant 0 : i32
    %c0_i32_0 = arith.constant 0 : i32
    return %arg0, %c0_i32 : i32, i32
  }
  func.func @transform_2(%arg0: i32, %arg1: i32) -> (i32, i32) {
    %c0_i32 = arith.constant 0 : i32
    %c0_i32_0 = arith.constant 0 : i32
    return %c0_i32, %arg1 : i32, i32
  }
  func.func @transform_3(%arg0: i32, %arg1: i32) -> (i32, i32) {
    %c0_i32 = arith.constant 0 : i32
    %c0_i32_0 = arith.constant 0 : i32
    return %c0_i32, %arg1 : i32, i32
  }
  func.func @transform_4(%arg0: i32, %arg1: i32) -> (i32, i32, i32) {
    %c0_i32 = arith.constant 0 : i32
    %c0_i32_0 = arith.constant 0 : i32
    return %arg1, %arg0, %c0_i32 : i32, i32, i32
  }
}

</mosaic_0001>

<bundles_post_ra>
// kernel: tpu_custom_call.1
= control target key start
LH: loop header
LB: loop body
LE: loop exit
PB: predicated region body
PF: predicated region fallthrough
CT: control target
= control target key end

     0   :  { %9 = vsyncpa [#allocation3], 0  ;;  %s1533_s0 = inlined_call_operand.hbm [shape: bf16[16,1024], index: 0, kind: input, shape index: {}]   ;;  %s1534_s1 = inlined_call_operand.vmem [shape: f32[16,1], index: 1, kind: input, shape index: {}]   ;;  %s1535_s2 = inlined_call_operand.hbm [shape: bf16[1024,256], index: 2, kind: input, shape index: {}]   ;;  %s1536_s3 = inlined_call_operand.vmem [shape: f32[1,256], index: 3, kind: input, shape index: {}]   ;;  %s1537_s4 = inlined_call_operand.vmem [shape: f32[1,16,1], index: 4, kind: output, shape index: {}]  }
   0x1   :  { %10 = vsyncpa [#allocation5], 0  ;;  %s1464_s15 = smov [#allocation2]  }
   0x2   :  { %s16_s16 = sshll.u32 %s1464_s15, 4  ;;  %s17_s16 = int_to_ptr.vmem [resolvable:$true] %s16_s16 }
   0x3   :  { %s1428_s17 = scalar_lea.vmem %s17_s16, 1024  ;;  %p1433_p1 = scmp.lt.s32.totalorder %s17_s16, %s17_s16 }
   0x4   :  { %p1429_p0 = scmp.ne.s32.totalorder %s17_s16, %s1428_s17  ;;  %p1434_p2 = scmp.lt.s32.totalorder %s1428_s17, %s1428_s17 }
   0x6   :  { %p1435_p3 = por %p1434_p2, %p1433_p1 }
   0x8   :  { %p1436_p4 = pnand %p1435_p3, %p1429_p0 }
   0xa   :  { %1439 = shalt.err (!%p1436_p4)
}
   0xb   :  { %s1465_s18 = smov 512   ;;  %s1466_s19 = smov 32  }
   0xc   :  { %22 = dma.hbm_to_vmem [thread:$0]  %s1533_s0, 1024, %s17_s16, [#allocation3], %s1465_s18, %s1465_s18, %s1466_s19  }
   0xd   :  { %s1467_s22 = smov [#allocation4]  }
   0xe   :  { %s30_s23 = sshll.u32 %s1467_s22, 4  ;;  %s31_s23 = int_to_ptr.vmem [resolvable:$true] %s30_s23 }
   0xf   :  { %s1448_s24 = scalar_lea.vmem %s31_s23, 16384  ;;  %p1453_p6 = scmp.lt.s32.totalorder %s31_s23, %s31_s23 }
  0x10   :  { %p1449_p5 = scmp.ne.s32.totalorder %s31_s23, %s1448_s24  ;;  %p1454_p7 = scmp.lt.s32.totalorder %s1448_s24, %s1448_s24 }
  0x12   :  { %p1455_p8 = por %p1454_p7, %p1453_p6 }
  0x14   :  { %p1456_p9 = pnand %p1455_p8, %p1449_p5 }
  0x16   :  { %1459 = shalt.err (!%p1456_p9)
}
  0x17   :  { %s1468_s25 = smov 128   ;;  %s1469_s26 = smov 8  }
  0x18   :  { %36 = dma.hbm_to_vmem [thread:$0]  %s1535_s2, 16384, %s31_s23, [#allocation5], %s1468_s25, %s1468_s25, %s1469_s26  }
  0x19   :  { %1460 = dma.done.wait [#allocation3], 1024  }
  0x1a   :  { %1461 = vsyncadd [#allocation3], 4294966272 }
  0x1b   :  { %1462 = dma.done.wait [#allocation5], 16384  }
  0x1c   :  { %1463 = vsyncadd [#allocation5], 4294950912  ;;  %v1228_v0 = vld [vmem:[#allocation4 + $0x74] ss:$8 sps:$4 sm:$0xff]   ;;  %v1232_v2 = vld [vmem:[#allocation4 + $0x70] ss:$8 sps:$4 sm:$0xff]  }
  0x1d   :  { %v1230_v1 = vld [vmem:[#allocation4 + $0x174] ss:$8 sps:$4 sm:$0xff]   ;;  %861 = vmatprep.subr.bf16.mxu0 %v1228_v0  ;;  %v1233_v3 = vld [vmem:[#allocation4 + $0x170] ss:$8 sps:$4 sm:$0xff]   ;;  %v1234_v4 = vld [vmem:[#allocation4 + $0x64] ss:$8 sps:$4 sm:$0xff]  }
  0x1e   :  { %904 = vmatprep.subr.bf16.mxu1 %v1230_v1  ;;  %862 = vmatpush1.bf16.msra.mxu0 %v1232_v2  ;;  %v1236_v5 = vld [vmem:[#allocation4 + $0x164] ss:$8 sps:$4 sm:$0xff]   ;;  %v1238_v6 = vld [vmem:[#allocation4 + $0x60] ss:$8 sps:$4 sm:$0xff]   ;;  %v1470_v8 = vmov 0   ;;  %vm1075_vm0 = vcmask 7168  }
  0x1f   :  { %905 = vmatpush1.bf16.msra.mxu1 %v1233_v3  ;;  %863 = vmatprep.subr.bf16.mxu0 %v1234_v4  ;;  %v1239_v7 = vld [vmem:[#allocation4 + $0x160] ss:$8 sps:$4 sm:$0xff]   ;;  %v1240_v9 = vld [vmem:[#allocation4 + $0x54] ss:$8 sps:$4 sm:$0xff]   ;;  %v1244_v11 = vld [vmem:[#allocation4 + $0x50] ss:$8 sps:$4 sm:$0xff]  }
  0x20   :  { %1227 = vset.pattern.permute.xlu0 %v1470_v8  ;;  %906 = vmatprep.subr.bf16.mxu1 %v1236_v5  ;;  %v1242_v10 = vld [vmem:[#allocation4 + $0x154] ss:$8 sps:$4 sm:$0xff]   ;;  %v1245_v12 = vld [vmem:[#allocation4 + $0x150] ss:$8 sps:$4 sm:$0xff]   ;;  %v1246_v13 = vld [vmem:[#allocation4 + $0x44] ss:$8 sps:$4 sm:$0xff]  }
  0x21   :  { %v1248_v14 = vld [vmem:[#allocation4 + $0x144] ss:$8 sps:$4 sm:$0xff]   ;;  %v1250_v15 = vld [vmem:[#allocation4 + $0x40] ss:$8 sps:$4 sm:$0xff]   ;;  %v1252_v17 = vld [vmem:[#allocation4 + $0x34] ss:$8 sps:$4 sm:$0xff]  }
  0x22   :  { %864 = vmatpush1.bf16.msra.mxu0 %v1238_v6  ;;  %v1251_v16 = vld [vmem:[#allocation4 + $0x140] ss:$8 sps:$4 sm:$0xff]   ;;  %v1254_v18 = vld [vmem:[#allocation4 + $0x134] ss:$8 sps:$4 sm:$0xff]   ;;  %v1256_v19 = vld [vmem:[#allocation4 + $0x30] ss:$8 sps:$4 sm:$0xff]  }
  0x23   :  { %907 = vmatpush1.bf16.msra.mxu1 %v1239_v7  ;;  %865 = vmatprep.subr.bf16.mxu0 %v1240_v9  ;;  %v1257_v20 = vld [vmem:[#allocation4 + $0x130] ss:$8 sps:$4 sm:$0xff]   ;;  %v1258_v21 = vld [vmem:[#allocation4 + $0x24] ss:$8 sps:$4 sm:$0xff]   ;;  %v1262_v23 = vld [vmem:[#allocation4 + $0x20] ss:$8 sps:$4 sm:$0xff]  }
  0x24   :  { %908 = vmatprep.subr.bf16.mxu1 %v1242_v10  ;;  %v1260_v22 = vld [vmem:[#allocation4 + $0x124] ss:$8 sps:$4 sm:$0xff]   ;;  %v1263_v24 = vld [vmem:[#allocation4 + $0x120] ss:$8 sps:$4 sm:$0xff]   ;;  %v1264_v25 = vld [vmem:[#allocation4 + $0x14] ss:$8 sps:$4 sm:$0xff]  }
  0x25   :  { %v1266_v26 = vld [vmem:[#allocation4 + $0x114] ss:$8 sps:$4 sm:$0xff]   ;;  %v1268_v27 = vld [vmem:[#allocation4 + $0x10] ss:$8 sps:$4 sm:$0xff]   ;;  %v1270_v29 = vld [vmem:[#allocation4 + $0x4] ss:$8 sps:$4 sm:$0xff]  }
  0x26   :  { %866 = vmatpush1.bf16.msra.mxu0 %v1244_v11  ;;  %v1269_v28 = vld [vmem:[#allocation4 + $0x110] ss:$8 sps:$4 sm:$0xff]   ;;  %v1272_v30 = vld [vmem:[#allocation4 + $0x104] ss:$8 sps:$4 sm:$0xff]   ;;  %v1274_v31 = vld [vmem:[#allocation4] ss:$8 sps:$4 sm:$0xff]  }
  0x27   :  { %909 = vmatpush1.bf16.msra.mxu1 %v1245_v12  ;;  %867 = vmatprep.subr.bf16.mxu0 %v1246_v13  ;;  %v1275_v32 = vld [vmem:[#allocation4 + $0x100] ss:$8 sps:$4 sm:$0xff]   ;;  %v1276_v33 = vld [vmem:[#allocation4 + $0xf4] ss:$8 sps:$4 sm:$0xff]   ;;  %v1280_v35 = vld [vmem:[#allocation4 + $0xf0] ss:$8 sps:$4 sm:$0xff]  }
  0x28   :  { %910 = vmatprep.subr.bf16.mxu1 %v1248_v14  ;;  %v1278_v34 = vld [vmem:[#allocation4 + $0x1f4] ss:$8 sps:$4 sm:$0xff]   ;;  %v1281_v36 = vld [vmem:[#allocation4 + $0x1f0] ss:$8 sps:$4 sm:$0xff]   ;;  %v1282_v37 = vld [vmem:[#allocation4 + $0xe4] ss:$8 sps:$4 sm:$0xff]  }
  0x29   :  { %v1284_v38 = vld [vmem:[#allocation4 + $0x1e4] ss:$8 sps:$4 sm:$0xff]   ;;  %v1286_v39 = vld [vmem:[#allocation4 + $0xe0] ss:$8 sps:$4 sm:$0xff]   ;;  %v1288_v41 = vld [vmem:[#allocation4 + $0xd4] ss:$8 sps:$4 sm:$0xff]  }
  0x2a   :  { %868 = vmatpush1.bf16.msra.mxu0 %v1250_v15  ;;  %v1287_v40 = vld [vmem:[#allocation4 + $0x1e0] ss:$8 sps:$4 sm:$0xff]   ;;  %v1290_v42 = vld [vmem:[#allocation4 + $0x1d4] ss:$8 sps:$4 sm:$0xff]   ;;  %v1292_v43 = vld [vmem:[#allocation4 + $0xd0] ss:$8 sps:$4 sm:$0xff]  }
  0x2b   :  { %911 = vmatpush1.bf16.msra.mxu1 %v1251_v16  ;;  %869 = vmatprep.subr.bf16.mxu0 %v1252_v17  ;;  %v1293_v44 = vld [vmem:[#allocation4 + $0x1d0] ss:$8 sps:$4 sm:$0xff]   ;;  %v1294_v45 = vld [vmem:[#allocation4 + $0xc4] ss:$8 sps:$4 sm:$0xff]   ;;  %v1298_v47 = vld [vmem:[#allocation4 + $0xc0] ss:$8 sps:$4 sm:$0xff]  }
  0x2c   :  { %912 = vmatprep.subr.bf16.mxu1 %v1254_v18  ;;  %v1296_v46 = vld [vmem:[#allocation4 + $0x1c4] ss:$8 sps:$4 sm:$0xff]   ;;  %v1299_v48 = vld [vmem:[#allocation4 + $0x1c0] ss:$8 sps:$4 sm:$0xff]   ;;  %v1300_v53 = vld [vmem:[#allocation4 + $0xb4] ss:$8 sps:$4 sm:$0xff]  }
  0x2d   :  { %v45_v49 = vld [vmem:[#allocation2] sm:$0xff]  ;;  %v46_v51 = vld [vmem:[#allocation2 + $0x8] sm:$0xff]  ;;  %v1302_v55 = vld [vmem:[#allocation4 + $0x1b4] ss:$8 sps:$4 sm:$0xff]  }
  0x2e   :  { %870 = vmatpush1.bf16.msra.mxu0 %v1256_v19  ;;  %v49_v50 = vld [vmem:[#allocation2 + $0x20] sm:$0xff]  ;;  %v50_v52 = vld [vmem:[#allocation2 + $0x28] sm:$0xff]  ;;  %v1304_v57 = vld [vmem:[#allocation4 + $0xb0] ss:$8 sps:$4 sm:$0xff]  }
  0x2f   :  { %913 = vmatpush1.bf16.msra.mxu1 %v1257_v20  ;;  %871 = vmatprep.subr.bf16.mxu0 %v1258_v21  ;;  %v1085_v54 = vcombine.high %v45_v49, %v49_v50  ;;  %v1087_v56 = vcombine.high %v46_v51, %v50_v52  ;;  %v1305_v58 = vld [vmem:[#allocation4 + $0x1b0] ss:$8 sps:$4 sm:$0xff]   ;;  %v1306_v59 = vld [vmem:[#allocation4 + $0xa4] ss:$8 sps:$4 sm:$0xff]   ;;  %v1310_v61 = vld [vmem:[#allocation4 + $0xa0] ss:$8 sps:$4 sm:$0xff]   ;;  %v1084_v9 = vcombine.low %v45_v49, %v49_v50 }
  0x30   :  { %914 = vmatprep.subr.bf16.mxu1 %v1260_v22  ;;  %v1308_v60 = vld [vmem:[#allocation4 + $0x1a4] ss:$8 sps:$4 sm:$0xff]   ;;  %v1311_v62 = vld [vmem:[#allocation4 + $0x1a0] ss:$8 sps:$4 sm:$0xff]   ;;  %v1312_v63 = vld [vmem:[#allocation4 + $0x94] ss:$8 sps:$4 sm:$0xff]   ;;  %v1086_v10 = vcombine.low %v46_v51, %v50_v52 }
  0x31   :  { %893 = vmatprep.mubr.bf16.mxu0 %v1085_v54  ;;  %936 = vmatprep.mubr.bf16.mxu1 %v1087_v56  ;;  %v1314_v0 = vld [vmem:[#allocation4 + $0x194] ss:$8 sps:$4 sm:$0xff]   ;;  %v1316_v1 = vld [vmem:[#allocation4 + $0x90] ss:$8 sps:$4 sm:$0xff]   ;;  %v1318_v3 = vld [vmem:[#allocation4 + $0x84] ss:$8 sps:$4 sm:$0xff]  }
  0x32   :  { %872 = vmatpush1.bf16.msra.mxu0 %v1262_v23  ;;  %v1317_v2 = vld [vmem:[#allocation4 + $0x190] ss:$8 sps:$4 sm:$0xff]   ;;  %v1320_v4 = vld [vmem:[#allocation4 + $0x184] ss:$8 sps:$4 sm:$0xff]   ;;  %v1322_v5 = vld [vmem:[#allocation4 + $0x80] ss:$8 sps:$4 sm:$0xff]  }
  0x33   :  { %915 = vmatpush1.bf16.msra.mxu1 %v1263_v24  ;;  %873 = vmatprep.subr.bf16.mxu0 %v1264_v25  ;;  %v1323_v6 = vld [vmem:[#allocation4 + $0x180] ss:$8 sps:$4 sm:$0xff]   ;;  %v1326_v7 = vld [vmem:[#allocation4 + $0x274] ss:$8 sps:$4 sm:$0xff]   ;;  %v1324_v11 = vld [vmem:[#allocation4 + $0x270] ss:$8 sps:$4 sm:$0xff]  }
  0x34   :  { %916 = vmatprep.subr.bf16.mxu1 %v1266_v26  ;;  %v1329_v8 = vld [vmem:[#allocation4 + $0x374] ss:$8 sps:$4 sm:$0xff]   ;;  %v1327_v12 = vld [vmem:[#allocation4 + $0x370] ss:$8 sps:$4 sm:$0xff]   ;;  %v1332_v13 = vld [vmem:[#allocation4 + $0x264] ss:$8 sps:$4 sm:$0xff]  }
  0x35   :  { %v1335_v14 = vld [vmem:[#allocation4 + $0x364] ss:$8 sps:$4 sm:$0xff]   ;;  %v1330_v15 = vld [vmem:[#allocation4 + $0x260] ss:$8 sps:$4 sm:$0xff]   ;;  %v1338_v17 = vld [vmem:[#allocation4 + $0x254] ss:$8 sps:$4 sm:$0xff]  }
  0x36   :  { %874 = vmatpush1.bf16.msra.mxu0 %v1268_v27  ;;  %v1333_v16 = vld [vmem:[#allocation4 + $0x360] ss:$8 sps:$4 sm:$0xff]   ;;  %v1341_v18 = vld [vmem:[#allocation4 + $0x354] ss:$8 sps:$4 sm:$0xff]   ;;  %v1336_v19 = vld [vmem:[#allocation4 + $0x250] ss:$8 sps:$4 sm:$0xff]  }
  0x37   :  { %917 = vmatpush1.bf16.msra.mxu1 %v1269_v28  ;;  %875 = vmatprep.subr.bf16.mxu0 %v1270_v29  ;;  %v1339_v20 = vld [vmem:[#allocation4 + $0x350] ss:$8 sps:$4 sm:$0xff]   ;;  %v1344_v21 = vld [vmem:[#allocation4 + $0x244] ss:$8 sps:$4 sm:$0xff]   ;;  %v1342_v23 = vld [vmem:[#allocation4 + $0x240] ss:$8 sps:$4 sm:$0xff]  }
  0x38   :  { %918 = vmatprep.subr.bf16.mxu1 %v1272_v30  ;;  %v1347_v22 = vld [vmem:[#allocation4 + $0x344] ss:$8 sps:$4 sm:$0xff]   ;;  %v1345_v24 = vld [vmem:[#allocation4 + $0x340] ss:$8 sps:$4 sm:$0xff]   ;;  %v1350_v25 = vld [vmem:[#allocation4 + $0x234] ss:$8 sps:$4 sm:$0xff]  }
  0x39   :  { %v1353_v26 = vld [vmem:[#allocation4 + $0x334] ss:$8 sps:$4 sm:$0xff]   ;;  %v1348_v27 = vld [vmem:[#allocation4 + $0x230] ss:$8 sps:$4 sm:$0xff]   ;;  %v1356_v29 = vld [vmem:[#allocation4 + $0x224] ss:$8 sps:$4 sm:$0xff]  }
  0x3a   :  { %876 = vmatpush1.bf16.msra.mxu0 %v1274_v31  ;;  %v1351_v28 = vld [vmem:[#allocation4 + $0x330] ss:$8 sps:$4 sm:$0xff]   ;;  %v1359_v30 = vld [vmem:[#allocation4 + $0x324] ss:$8 sps:$4 sm:$0xff]   ;;  %v1354_v31 = vld [vmem:[#allocation4 + $0x220] ss:$8 sps:$4 sm:$0xff]  }
  0x3b   :  { %919 = vmatpush1.bf16.msra.mxu1 %v1275_v32  ;;  %877 = vmatprep.subr.bf16.mxu0 %v1276_v33  ;;  %v1357_v32 = vld [vmem:[#allocation4 + $0x320] ss:$8 sps:$4 sm:$0xff]   ;;  %v1362_v33 = vld [vmem:[#allocation4 + $0x214] ss:$8 sps:$4 sm:$0xff]   ;;  %v1372_v51 = vld [vmem:[#allocation4 + $0x2f0] ss:$8 sps:$4 sm:$0xff]  }
  0x3c   :  { %920 = vmatprep.subr.bf16.mxu1 %v1278_v34  ;;  %v1365_v34 = vld [vmem:[#allocation4 + $0x314] ss:$8 sps:$4 sm:$0xff]   ;;  %v1375_v52 = vld [vmem:[#allocation4 + $0x3f0] ss:$8 sps:$4 sm:$0xff]   ;;  %v1383_v54 = vld [vmem:[#allocation4 + $0x3e4] ss:$8 sps:$4 sm:$0xff]  }
  0x3d   :  { %v1374_v49 = vld [vmem:[#allocation4 + $0x2f4] ss:$8 sps:$4 sm:$0xff]   ;;  %v1381_v56 = vld [vmem:[#allocation4 + $0x3e0] ss:$8 sps:$4 sm:$0xff]  }
  0x3e   :  { %878 = vmatpush2.bf16.msra.mxu0 %v1280_v35  ;;  %v1502_v35 = vld [vmem:[#allocation2 + $0x10] sm:$0xff] }
  0x3f   :  { %921 = vmatpush2.bf16.msra.mxu1 %v1281_v36  ;;  %879 = vmatprep.subr.bf16.mxu0 %v1282_v37  ;;  %v1504_v36 = vld [vmem:[#allocation2 + $0x30] sm:$0xff]  ;;  %v1506_v37 = vld [vmem:[#allocation2 + $0x18] sm:$0xff] }
  0x40   :  { %922 = vmatprep.subr.bf16.mxu1 %v1284_v38  ;;  %v1508_v38 = vld [vmem:[#allocation2 + $0x38] sm:$0xff] }
  0x41   :  { %v1377_v50 = vld [vmem:[#allocation4 + $0x3f4] ss:$8 sps:$4 sm:$0xff]  }
  0x42   :  { %880 = vmatpush2.bf16.msra.mxu0 %v1286_v39  ;;  %v1360_v39 = vld [vmem:[#allocation4 + $0x210] ss:$8 sps:$4 sm:$0xff]  }
  0x43   :  { %923 = vmatpush2.bf16.msra.mxu1 %v1287_v40  ;;  %881 = vmatprep.subr.bf16.mxu0 %v1288_v41  ;;  %v1363_v40 = vld [vmem:[#allocation4 + $0x310] ss:$8 sps:$4 sm:$0xff]   ;;  %v1089_v41 = vcombine.high %v1502_v35, %v1504_v36 }
  0x44   :  { %924 = vmatprep.subr.bf16.mxu1 %v1290_v42  ;;  %v1033_v42 = vld [vmem:[%s1534_s1] sm:$0xff] }
  0x45   :  { %1038 = vperm.xlu0 %1227, %v1033_v42  }
  0x46   :  { %882 = vmatpush2.bf16.msra.mxu0 %v1292_v43  ;;  %v1368_v43 = vld [vmem:[#allocation4 + $0x204] ss:$8 sps:$4 sm:$0xff]  }
  0x47   :  { %925 = vmatpush2.bf16.msra.mxu1 %v1293_v44  ;;  %883 = vmatprep.subr.bf16.mxu0 %v1294_v45  ;;  %v1371_v44 = vld [vmem:[#allocation4 + $0x304] ss:$8 sps:$4 sm:$0xff]   ;;  %v1091_v45 = vcombine.high %v1506_v37, %v1508_v38 }
  0x48   :  { %926 = vmatprep.subr.bf16.mxu1 %v1296_v46  ;;  %v1034_v46 = vld [vmem:[%s1534_s1 + $0x8] sm:$0xff] }
  0x49   :  { %1043 = vperm.xlu0 %1227, %v1034_v46  }
  0x4a   :  { %884 = vmatpush2.bf16.msra.mxu0 %v1298_v47  ;;  %v1366_v47 = vld [vmem:[#allocation4 + $0x200] ss:$8 sps:$4 sm:$0xff]  }
  0x4b   :  { %927 = vmatpush2.bf16.msra.mxu1 %v1299_v48  ;;  %885 = vmatprep.subr.bf16.mxu0 %v1300_v53  ;;  %v1369_v48 = vld [vmem:[#allocation4 + $0x300] ss:$8 sps:$4 sm:$0xff]   ;;  %v1380_v53 = vld [vmem:[#allocation4 + $0x2e4] ss:$8 sps:$4 sm:$0xff]  }
  0x4c   :  { %928 = vmatprep.subr.bf16.mxu1 %v1302_v55  ;;  %v1378_v55 = vld [vmem:[#allocation4 + $0x2e0] ss:$8 sps:$4 sm:$0xff]  }
  0x4e   :  { %886 = vmatpush2.bf16.msra.mxu0 %v1304_v57  ;;  %v1386_v57 = vld [vmem:[#allocation4 + $0x2d4] ss:$8 sps:$4 sm:$0xff]  }
  0x4f   :  { %929 = vmatpush2.bf16.msra.mxu1 %v1305_v58  ;;  %887 = vmatprep.subr.bf16.mxu0 %v1306_v59  ;;  %v1389_v58 = vld [vmem:[#allocation4 + $0x3d4] ss:$8 sps:$4 sm:$0xff]   ;;  %v1384_v59 = vld [vmem:[#allocation4 + $0x2d0] ss:$8 sps:$4 sm:$0xff]  }
  0x50   :  { %930 = vmatprep.subr.bf16.mxu1 %v1308_v60  ;;  %v1387_v60 = vld [vmem:[#allocation4 + $0x3d0] ss:$8 sps:$4 sm:$0xff]  }
  0x52   :  { %888 = vmatpush2.bf16.msra.mxu0 %v1310_v61  ;;  %v1392_v61 = vld [vmem:[#allocation4 + $0x2c4] ss:$8 sps:$4 sm:$0xff]  }
  0x53   :  { %931 = vmatpush2.bf16.msra.mxu1 %v1311_v62  ;;  %889 = vmatprep.subr.bf16.mxu0 %v1312_v63  ;;  %v1395_v62 = vld [vmem:[#allocation4 + $0x3c4] ss:$8 sps:$4 sm:$0xff]   ;;  %v1390_v63 = vld [vmem:[#allocation4 + $0x2c0] ss:$8 sps:$4 sm:$0xff]  }
  0x54   :  { %932 = vmatprep.subr.bf16.mxu1 %v1314_v0  ;;  %v1393_v0 = vld [vmem:[#allocation4 + $0x3c0] ss:$8 sps:$4 sm:$0xff]  }
  0x56   :  { %890 = vmatpush2.bf16.msra.mxu0 %v1316_v1  ;;  %v1398_v1 = vld [vmem:[#allocation4 + $0x2b4] ss:$8 sps:$4 sm:$0xff]  }
  0x57   :  { %933 = vmatpush2.bf16.msra.mxu1 %v1317_v2  ;;  %891 = vmatprep.subr.bf16.mxu0 %v1318_v3  ;;  %v1401_v2 = vld [vmem:[#allocation4 + $0x3b4] ss:$8 sps:$4 sm:$0xff]   ;;  %v1396_v3 = vld [vmem:[#allocation4 + $0x2b0] ss:$8 sps:$4 sm:$0xff]  }
  0x58   :  { %934 = vmatprep.subr.bf16.mxu1 %v1320_v4  ;;  %v1399_v4 = vld [vmem:[#allocation4 + $0x3b0] ss:$8 sps:$4 sm:$0xff]  }
  0x5a   :  { %892 = vmatpush2.bf16.msra.mxu0 %v1322_v5  ;;  %v1404_v5 = vld [vmem:[#allocation4 + $0x2a4] ss:$8 sps:$4 sm:$0xff]  }
  0x5b   :  { %935 = vmatpush2.bf16.msra.mxu1 %v1323_v6  ;;  %947 = vmatprep.subr.bf16.mxu0 %v1326_v7  ;;  %v1407_v6 = vld [vmem:[#allocation4 + $0x3a4] ss:$8 sps:$4 sm:$0xff]   ;;  %v1402_v7 = vld [vmem:[#allocation4 + $0x2a0] ss:$8 sps:$4 sm:$0xff]  }
  0x5c   :  { %990 = vmatprep.subr.bf16.mxu1 %v1329_v8  ;;  %v1405_v8 = vld [vmem:[#allocation4 + $0x3a0] ss:$8 sps:$4 sm:$0xff]  }
  0x5d   :  { %894 = vmatmul.mubr.bf16.vlgmr.msra.gmra.mxu0 %v1084_v9  ;;  %v1410_v9 = vld [vmem:[#allocation4 + $0x294] ss:$8 sps:$4 sm:$0xff]  }
  0x5e   :  { %937 = vmatmul.mubr.bf16.vlgmr.msra.gmra.mxu1 %v1086_v10  ;;  %948 = vmatpush1.bf16.msra.mxu0 %v1324_v11  ;;  %v1413_v10 = vld [vmem:[#allocation4 + $0x394] ss:$8 sps:$4 sm:$0xff]   ;;  %v1408_v11 = vld [vmem:[#allocation4 + $0x290] ss:$8 sps:$4 sm:$0xff]  }
  0x5f   :  { %991 = vmatpush1.bf16.msra.mxu1 %v1327_v12  ;;  %949 = vmatprep.subr.bf16.mxu0 %v1332_v13  ;;  %v1411_v12 = vld [vmem:[#allocation4 + $0x390] ss:$8 sps:$4 sm:$0xff]   ;;  %v1416_v13 = vld [vmem:[#allocation4 + $0x284] ss:$8 sps:$4 sm:$0xff]  }
  0x60   :  { %992 = vmatprep.subr.bf16.mxu1 %v1335_v14  ;;  %979 = vmatprep.mubr.bf16.mxu0 %v1089_v41  ;;  %v1419_v14 = vld [vmem:[#allocation4 + $0x384] ss:$8 sps:$4 sm:$0xff]  }
  0x61   :  { %1022 = vmatprep.mubr.bf16.mxu1 %v1091_v45 }
  0x62   :  { %950 = vmatpush1.bf16.msra.mxu0 %v1330_v15  ;;  %v1414_v15 = vld [vmem:[#allocation4 + $0x280] ss:$8 sps:$4 sm:$0xff]  }
  0x63   :  { %993 = vmatpush1.bf16.msra.mxu1 %v1333_v16  ;;  %951 = vmatprep.subr.bf16.mxu0 %v1338_v17  ;;  %v1417_v16 = vld [vmem:[#allocation4 + $0x380] ss:$8 sps:$4 sm:$0xff]   ;;  %v1088_v17 = vcombine.low %v1502_v35, %v1504_v36 }
  0x64   :  { %994 = vmatprep.subr.bf16.mxu1 %v1341_v18  ;;  %v1090_v18 = vcombine.low %v1506_v37, %v1508_v38 }
  0x66   :  { %952 = vmatpush1.bf16.msra.mxu0 %v1336_v19 }
  0x67   :  { %995 = vmatpush1.bf16.msra.mxu1 %v1339_v20  ;;  %953 = vmatprep.subr.bf16.mxu0 %v1344_v21  ;;  %v1047_v21 = vlaneseq }
  0x68   :  { %996 = vmatprep.subr.bf16.mxu1 %v1347_v22 }
  0x6a   :  { %954 = vmatpush1.bf16.msra.mxu0 %v1342_v23 }
  0x6b   :  { %997 = vmatpush1.bf16.msra.mxu1 %v1345_v24  ;;  %955 = vmatprep.subr.bf16.mxu0 %v1350_v25  ;;  %v1048_v24 = vshrl.u32 %v1047_v21, 7 }
  0x6c   :  { %998 = vmatprep.subr.bf16.mxu1 %v1353_v26 }
  0x6e   :  { %956 = vmatpush1.bf16.msra.mxu0 %v1348_v27  ;;  %v1049_v27 = vsub.s32 0, %v1048_v24 }
  0x6f   :  { %999 = vmatpush1.bf16.msra.mxu1 %v1351_v28  ;;  %957 = vmatprep.subr.bf16.mxu0 %v1356_v29  ;;  %v1053_v28 = vsub.s32 1, %v1048_v24  ;;  %v1035_v29 = vld [vmem:[%s1536_s3] sm:$0x3] }
  0x70   :  { %1000 = vmatprep.subr.bf16.mxu1 %v1359_v30  ;;  %v1050_v35 = vrot.slane %v1035_v29, %v1049_v27 }
  0x71   :  { %v1054_v36 = vrot.slane %v1035_v29, %v1053_v28 }
  0x72   :  { %958 = vmatpush1.bf16.msra.mxu0 %v1354_v31 }
  0x73   :  { %1001 = vmatpush1.bf16.msra.mxu1 %v1357_v32  ;;  %959 = vmatprep.subr.bf16.mxu0 %v1362_v33 }
  0x74   :  { %1002 = vmatprep.subr.bf16.mxu1 %v1365_v34 }
  0x76   :  { %960 = vmatpush1.bf16.msra.mxu0 %v1360_v39 }
  0x77   :  { %1003 = vmatpush1.bf16.msra.mxu1 %v1363_v40  ;;  %961 = vmatprep.subr.bf16.mxu0 %v1368_v43 }
  0x78   :  { %1004 = vmatprep.subr.bf16.mxu1 %v1371_v44 }
  0x7a   :  { %962 = vmatpush1.bf16.msra.mxu0 %v1366_v47 }
  0x7b   :  { %1005 = vmatpush1.bf16.msra.mxu1 %v1369_v48  ;;  %963 = vmatprep.subr.bf16.mxu0 %v1374_v49 }
  0x7c   :  { %1006 = vmatprep.subr.bf16.mxu1 %v1377_v50 }
  0x7e   :  { %964 = vmatpush2.bf16.msra.mxu0 %v1372_v51 }
  0x7f   :  { %1007 = vmatpush2.bf16.msra.mxu1 %v1375_v52  ;;  %965 = vmatprep.subr.bf16.mxu0 %v1380_v53 }
  0x80   :  { %1008 = vmatprep.subr.bf16.mxu1 %v1383_v54 }
  0x82   :  { %966 = vmatpush2.bf16.msra.mxu0 %v1378_v55 }
  0x83   :  { %1009 = vmatpush2.bf16.msra.mxu1 %v1381_v56  ;;  %967 = vmatprep.subr.bf16.mxu0 %v1386_v57 }
  0x84   :  { %1010 = vmatprep.subr.bf16.mxu1 %v1389_v58 }
  0x86   :  { %968 = vmatpush2.bf16.msra.mxu0 %v1384_v59 }
  0x87   :  { %1011 = vmatpush2.bf16.msra.mxu1 %v1387_v60  ;;  %969 = vmatprep.subr.bf16.mxu0 %v1392_v61 }
  0x88   :  { %1012 = vmatprep.subr.bf16.mxu1 %v1395_v62 }
  0x8a   :  { %970 = vmatpush2.bf16.msra.mxu0 %v1390_v63 }
  0x8b   :  { %1013 = vmatpush2.bf16.msra.mxu1 %v1393_v0  ;;  %971 = vmatprep.subr.bf16.mxu0 %v1398_v1 }
  0x8c   :  { %1014 = vmatprep.subr.bf16.mxu1 %v1401_v2 }
  0x8e   :  { %972 = vmatpush2.bf16.msra.mxu0 %v1396_v3 }
  0x8f   :  { %1015 = vmatpush2.bf16.msra.mxu1 %v1399_v4  ;;  %973 = vmatprep.subr.bf16.mxu0 %v1404_v5 }
  0x90   :  { %1016 = vmatprep.subr.bf16.mxu1 %v1407_v6 }
  0x92   :  { %974 = vmatpush2.bf16.msra.mxu0 %v1402_v7 }
  0x93   :  { %1017 = vmatpush2.bf16.msra.mxu1 %v1405_v8  ;;  %975 = vmatprep.subr.bf16.mxu0 %v1410_v9 }
  0x94   :  { %1018 = vmatprep.subr.bf16.mxu1 %v1413_v10 }
  0x96   :  { %976 = vmatpush2.bf16.msra.mxu0 %v1408_v11 }
  0x97   :  { %1019 = vmatpush2.bf16.msra.mxu1 %v1411_v12  ;;  %977 = vmatprep.subr.bf16.mxu0 %v1416_v13 }
  0x98   :  { %1020 = vmatprep.subr.bf16.mxu1 %v1419_v14 }
  0x9a   :  { %978 = vmatpush2.bf16.msra.mxu0 %v1414_v15 }
  0x9b   :  { %1021 = vmatpush2.bf16.msra.mxu1 %v1417_v16 }
  0x9d   :  { %980 = vmatmul.mubr.bf16.vlgmr.msra.gmra.mxu0 %v1088_v17 }
  0x9e   :  { %1023 = vmatmul.mubr.bf16.vlgmr.msra.gmra.mxu1 %v1090_v18 }
  0xc0   :  { %v1039_v39 = vpop.permute.xlu0 %1038 }
  0xc1   :  { %v1057_v45 = vadd.f32 %v1050_v35, %v1039_v39  ;;  %v1058_v46 = vadd.f32 %v1054_v36, %v1039_v39 }
  0xc4   :  { %v1044_v57 = vpop.permute.xlu0 %1043 }
  0xc5   :  { %v1059_v63 = vadd.f32 %v1050_v35, %v1044_v57  ;;  %v1060_v0 = vadd.f32 %v1054_v36, %v1044_v57 }
 0x11d   :  { %v895_v19 = vpop.f32.mrf.mxu0 }
 0x11e   :  { %v938_v20 = vpop.f32.mrf.mxu1 }
 0x11f   :  { %v897_v22 = vpop.f32.mrf.mxu0  ;;  %v939_v32 = vadd.f32 %v938_v20, %v895_v19 }
 0x120   :  { %v940_v23 = vpop.f32.mrf.mxu1 }
 0x121   :  { %v899_v25 = vpop.f32.mrf.mxu0  ;;  %v941_v37 = vadd.f32 %v940_v23, %v897_v22 }
 0x122   :  { %v942_v26 = vpop.f32.mrf.mxu1 }
 0x123   :  { %v901_v30 = vpop.f32.mrf.mxu0  ;;  %v943_v42 = vadd.f32 %v942_v26, %v899_v25 }
 0x124   :  { %v944_v31 = vpop.f32.mrf.mxu1 }
 0x125   :  { %v945_v49 = vadd.f32 %v944_v31, %v901_v30 }
 0x15d   :  { %v981_v33 = vpop.f32.mrf.mxu0 }
 0x15e   :  { %v1024_v34 = vpop.f32.mrf.mxu1  ;;  %v982_v38 = vadd.f32 %v981_v33, %v939_v32 }
 0x15f   :  { %v983_v40 = vpop.f32.mrf.mxu0 }
 0x160   :  { %v1026_v41 = vpop.f32.mrf.mxu1  ;;  %v1025_v43 = vadd.f32 %v1024_v34, %v982_v38  ;;  %v984_v44 = vadd.f32 %v983_v40, %v941_v37 }
 0x161   :  { %v985_v47 = vpop.f32.mrf.mxu0 }
 0x162   :  { %v1028_v48 = vpop.f32.mrf.mxu1  ;;  %v1061_v50 = vmul.f32 2.0, %v1025_v43  ;;  %v1027_v51 = vadd.f32 %v1026_v41, %v984_v44  ;;  %v986_v52 = vadd.f32 %v985_v47, %v943_v42 }
 0x163   :  { %v987_v53 = vpop.f32.mrf.mxu0 }
 0x164   :  { %v1062_v54 = vmul.f32 2.0, %v1027_v51  ;;  %v1029_v55 = vadd.f32 %v1028_v48, %v986_v52  ;;  %v988_v56 = vadd.f32 %v987_v53, %v945_v49  ;;  %v1030_v58 = vpop.f32.mrf.mxu1  ;;  %v1065_v61 = vsub.f32 %v1057_v45, %v1061_v50 }
 0x166   :  { %v1063_v59 = vmul.f32 2.0, %v1029_v55  ;;  %v1031_v60 = vadd.f32 %v1030_v58, %v988_v56  ;;  %v1066_v62 = vsub.f32 %v1058_v46, %v1062_v54 }
 0x168   :  { %v1064_v1 = vmul.f32 2.0, %v1031_v60  ;;  %v1069_v2 = vmin.f32 %v1065_v61, %v1066_v62  ;;  %v1067_v3 = vsub.f32 %v1059_v63, %v1063_v59 }
 0x16a   :  { %v1068_v4 = vsub.f32 %v1060_v0, %v1064_v1  ;;  %1070 = vmin.xlane.f32.xlu1 %v1069_v2 }
 0x16c   :  { %v1072_v5 = vmin.f32 %v1067_v3, %v1068_v4 }
 0x16e   :  { %1073 = vmin.xlane.f32.xlu1 %v1072_v5 }
 0x1f3   :  { %v1071_v6 = vpop.xlane.xlu1 %1070 }
 0x1f4   :  { %1076 = vst.msk [vmem:[%s1537_s4] sm:$0xff] %vm1075_vm0, %v1071_v6 }
 0x1f7   :  { %v1074_v7 = vpop.xlane.xlu1 %1073 }
 0x1f8   :  { %1077 = vst.msk [vmem:[%s1537_s4 + $0x8] sm:$0xff] %vm1075_vm0, %v1074_v7 }
 0x1f9   :  { %1082 = vsyncpa [#allocation3], 1 }
 0x1fa   :  { %1083 = vsyncpa [#allocation5], 1 }

</bundles_post_ra>
